<compile_context>
chip_gen: v6e
topology: v6e:2x2x1
jax: 0.10.0
libtpu: 0.0.40
codegen_flags: <defaults>
</compile_context>

<pallas_src>
import math

import jax
import jax.numpy as jnp
import numpy as np
from jax import lax
from jax.experimental import pallas as pl
from jax.experimental.pallas import tpu as pltpu


# Large finite negative stand-in for -inf: exp(MASK_VALUE - m) underflows to
# exactly 0 in f32, so masked positions get exactly zero probability (same
# result as the reference's additive -inf mask) while keeping the online
# softmax free of inf - inf NaNs.
MASK_VALUE = -1e30


# ----------------------------- Pallas kernel --------------------------------
def dilated_flash_kernel(rates_ref, q_ref, k_ref, v_ref, o_ref,
                         qs_sc, m_sc, l_sc, acc_sc):
    # rates_ref: (H,) int32 in SMEM (scalar prefetch) -- per-head dilation rate.
    # q_ref: (tq, Dh); k_ref/v_ref: (tk, Dh); o_ref: (tq, Dh)  [compute dtype / out dtype]
    # qs_sc: (tq, Dh) compute-dtype scratch holding q * 1/sqrt(Dh).
    # m_sc/l_sc: (tq, 1) f32; acc_sc: (tq, Dh) f32 -- online softmax state.
    h = pl.program_id(1)
    qi = pl.program_id(2)
    ki = pl.program_id(3)
    tq, dh = q_ref.shape
    tk = k_ref.shape[0]

    @pl.when(ki == 0)
    def _init():
        # Fold the 1/sqrt(Dh) score scale into Q once per q-tile (not per KV step,
        # and not in the wrapper).
        qs_sc[...] = (q_ref[...].astype(jnp.float32)
                      * (1.0 / math.sqrt(dh))).astype(qs_sc.dtype)
        m_sc[...] = jnp.full_like(m_sc, MASK_VALUE)
        l_sc[...] = jnp.zeros_like(l_sc)
        acc_sc[...] = jnp.zeros_like(acc_sc)

    # Q @ K^T contracting the last dim of both operands (no in-kernel transpose),
    # bf16 operands, f32 MXU accumulation.
    s = lax.dot_general(qs_sc[...], k_ref[...], (((1,), (1,)), ((), ())),
                        preferred_element_type=jnp.float32)          # (tq, tk)

    # Dilated mask built in-kernel. Dilation rates are powers of two (2**i), so
    # (i - j) % d == 0  <=>  ((i - j) & (d - 1)) == 0 (two's complement handles
    # negative differences); diff == 0 (diagonal) is kept automatically,
    # matching `abs(i-j) % d == 0 or i == j`.
    d = rates_ref[h]
    row = qi * tq + lax.broadcasted_iota(jnp.int32, (tq, tk), 0)
    col = ki * tk + lax.broadcasted_iota(jnp.int32, (tq, tk), 1)
    keep = ((row - col) & (d - 1)) == 0
    s = jnp.where(keep, s, MASK_VALUE)

    # Online softmax update (f32 state in VMEM scratch; KV axis is the innermost
    # grid dim and marked "arbitrary", which is what makes this pattern legal).
    m_prev = m_sc[...]
    m_next = jnp.maximum(m_prev, jnp.max(s, axis=-1, keepdims=True))
    alpha = jnp.exp(m_prev - m_next)
    p = jnp.exp(s - m_next)
    l_sc[...] = alpha * l_sc[...] + jnp.sum(p, axis=-1, keepdims=True)
    acc_sc[...] = alpha * acc_sc[...] + jnp.dot(
        p.astype(v_ref.dtype), v_ref[...], preferred_element_type=jnp.float32)
    m_sc[...] = m_next

    @pl.when(ki == pl.num_programs(3) - 1)
    def _finalize():
        # Normalize the (tq, Dh) accumulator, not the (tq, tk) probabilities.
        l = l_sc[...]
        inv_l = pl.reciprocal(l, approx=True)          # EUP slot
        inv_l = inv_l * (2.0 - l * inv_l)              # one Newton step -> ~f32 exact
        o_ref[...] = (acc_sc[...] * inv_l).astype(o_ref.dtype)


def _dilated_attention_call(q, k, v, rates, *, B, H, S, Dh, fused, tq, tk, out_dtype):
    """Runs the flash-style dilated-attention kernel.

    fused=True : q/k/v are (B, S, H*Dh) (lane-dense, no head transpose), output
                 is (B, S, H*Dh).  Requires Dh % 128 == 0.
    fused=False: q/k/v are (B, H, S, Dh), output is (B, H, S, Dh).
    """
    if fused:
        def blk(t):
            return (pl.Squeezed(), t, Dh)
        q_spec = pl.BlockSpec(blk(tq), lambda b, h, qi, ki, _r: (b, qi, h))
        k_spec = pl.BlockSpec(blk(tk), lambda b, h, qi, ki, _r: (b, ki, h))
        v_spec = pl.BlockSpec(blk(tk), lambda b, h, qi, ki, _r: (b, ki, h))
        out_spec = pl.BlockSpec(blk(tq), lambda b, h, qi, ki, _r: (b, qi, h))
        out_shape = jax.ShapeDtypeStruct((B, S, H * Dh), out_dtype)
    else:
        def blk(t):
            return (pl.Squeezed(), pl.Squeezed(), t, Dh)
        q_spec = pl.BlockSpec(blk(tq), lambda b, h, qi, ki, _r: (b, h, qi, 0))
        k_spec = pl.BlockSpec(blk(tk), lambda b, h, qi, ki, _r: (b, h, ki, 0))
        v_spec = pl.BlockSpec(blk(tk), lambda b, h, qi, ki, _r: (b, h, ki, 0))
        out_spec = pl.BlockSpec(blk(tq), lambda b, h, qi, ki, _r: (b, h, qi, 0))
        out_shape = jax.ShapeDtypeStruct((B, H, S, Dh), out_dtype)

    return pl.pallas_call(
        dilated_flash_kernel,
        out_shape=out_shape,
        grid_spec=pltpu.PrefetchScalarGridSpec(
            num_scalar_prefetch=1,
            grid=(B, H, S // tq, S // tk),
            in_specs=[q_spec, k_spec, v_spec],
            out_specs=out_spec,
            scratch_shapes=[
                pltpu.VMEM((tq, Dh), q.dtype),       # q * 1/sqrt(Dh) (compute dtype)
                pltpu.VMEM((tq, 1), jnp.float32),    # m (running max)
                pltpu.VMEM((tq, 1), jnp.float32),    # l (running denom)
                pltpu.VMEM((tq, Dh), jnp.float32),   # acc
            ],
        ),
        compiler_params=pltpu.CompilerParams(
            # KV axis must stay innermost + arbitrary (accumulator correctness);
            # B/H/qi are parallel for megacore sharding on v7x.
            dimension_semantics=("parallel", "parallel", "parallel", "arbitrary"),
        ),
    )(rates, q, k, v)


def dilated_attention_pallas(q, k, v, head_dilation_rates, *, tile_q=256, tile_k=256,
                             compute_dtype=jnp.bfloat16):
    """q, k, v: (B, H, S, Dh); head_dilation_rates: length-H ints (powers of two).

    Returns (B, H, S, Dh) in q.dtype. (Split-heads entry point; the forward
    wrapper below prefers the fused lane-dense path when Dh % 128 == 0.)
    """
    B, H, S, Dh = q.shape
    rates_list = [int(r) for r in head_dilation_rates]
    assert all(r > 0 and (r & (r - 1)) == 0 for r in rates_list), \
        "dilation rates must be powers of two (the &-mask trick assumes it)"
    tq = min(S, tile_q)
    tk = min(S, tile_k)
    assert S % tq == 0 and S % tk == 0, "seq_len must be a multiple of the tile size"
    assert max(rates_list) <= tk, \
        "max dilation rate must be <= tile_k (guarantees no fully-masked KV block row)"

    rates = jnp.asarray(rates_list, dtype=jnp.int32)
    out_dtype = q.dtype
    qc, kc, vc = (t.astype(compute_dtype) for t in (q, k, v))
    return _dilated_attention_call(qc, kc, vc, rates, B=B, H=H, S=S, Dh=Dh,
                                   fused=False, tq=tq, tk=tk, out_dtype=out_dtype)


# -------------------------- module-level wrapper -----------------------------
class DilatedAttentionParams:
    """Deterministic parameter container mirroring the PyTorch module."""

    def __init__(self, embedding_dim, num_heads, num_dilation_rates=4, key=None):
        assert embedding_dim % num_heads == 0
        self.embedding_dim = embedding_dim
        self.num_heads = num_heads
        self.head_dim = embedding_dim // num_heads
        self.dilation_rates = [2 ** i for i in range(num_dilation_rates)]
        self.head_dilation_rates = [
            self.dilation_rates[i % len(self.dilation_rates)] for i in range(num_heads)
        ]
        key = jax.random.PRNGKey(0) if key is None else key
        ks = jax.random.split(key, 8)
        D = embedding_dim
        std = 0.02
        # PyTorch nn.Linear stores weight as (out, in); y = x @ W.T + b
        self.Wq = jax.random.normal(ks[0], (D, D), jnp.float32) * std
        self.bq = jax.random.normal(ks[1], (D,), jnp.float32) * std
        self.Wk = jax.random.normal(ks[2], (D, D), jnp.float32) * std
        self.bk = jax.random.normal(ks[3], (D,), jnp.float32) * std
        self.Wv = jax.random.normal(ks[4], (D, D), jnp.float32) * std
        self.bv = jax.random.normal(ks[5], (D,), jnp.float32) * std
        self.Wo = jax.random.normal(ks[6], (D, D), jnp.float32) * std
        self.bo = jax.random.normal(ks[7], (D,), jnp.float32) * std

    def head_masks(self, seq_len):
        # Used only by the pure-JAX reference (the kernel builds its mask in-kernel).
        idx = jnp.arange(seq_len)
        diff = jnp.abs(idx[:, None] - idx[None, :])
        diag = idx[:, None] == idx[None, :]
        masks = []
        for d in self.head_dilation_rates:
            cond = (diff % d == 0) | diag
            masks.append(jnp.where(cond, 0.0, -jnp.inf).astype(jnp.float32))
        return jnp.stack(masks, axis=0)  # (H, S, S)


def dilated_attention_forward(params: DilatedAttentionParams, x, *,
                              tile_q=256, tile_k=256, compute_dtype=jnp.bfloat16):
    """x: (B, S, D). Returns (B, S, D)."""
    B, S, D = x.shape
    H, Dh = params.num_heads, params.head_dim

    # Linear projections (plain JAX glue). Feature axis is already head-major
    # (head h occupies features [h*Dh, (h+1)*Dh)), matching the fused layout.
    q = x @ params.Wq.T + params.bq
    k = x @ params.Wk.T + params.bk
    v = x @ params.Wv.T + params.bv

    rates_list = [int(r) for r in params.head_dilation_rates]
    assert all(r > 0 and (r & (r - 1)) == 0 for r in rates_list), \
        "dilation rates must be powers of two (the &-mask trick assumes it)"
    tq = min(S, tile_q)
    tk = min(S, tile_k)
    assert S % tq == 0 and S % tk == 0, "seq_len must be a multiple of the tile size"
    assert max(rates_list) <= tk, \
        "max dilation rate must be <= tile_k (guarantees no fully-masked KV block row)"

    rates = jnp.asarray(rates_list, dtype=jnp.int32)
    out_dtype = x.dtype
    fused = (Dh % 128 == 0)

    if fused:
        # Lane-dense fused path: no split_heads transposes, head is a lane slice.
        qc, kc, vc = (t.astype(compute_dtype) for t in (q, k, v))
        attn = _dilated_attention_call(qc, kc, vc, rates, B=B, H=H, S=S, Dh=Dh,
                                       fused=True, tq=tq, tk=tk, out_dtype=out_dtype)
        out = attn                                   # (B, S, H*Dh) == (B, S, D)
    else:
        def split_heads(t):
            return t.reshape(B, S, H, Dh).transpose(0, 2, 1, 3)
        qc = split_heads(q).astype(compute_dtype)
        kc = split_heads(k).astype(compute_dtype)
        vc = split_heads(v).astype(compute_dtype)
        attn = _dilated_attention_call(qc, kc, vc, rates, B=B, H=H, S=S, Dh=Dh,
                                       fused=False, tq=tq, tk=tk, out_dtype=out_dtype)
        out = attn.transpose(0, 2, 1, 3).reshape(B, S, D)

    return out @ params.Wo.T + params.bo


# ------------------------------ pure-JAX reference ---------------------------
def dilated_attention_reference(params: DilatedAttentionParams, x):
    B, S, D = x.shape
    H, Dh = params.num_heads, params.head_dim
    q = (x @ params.Wq.T + params.bq).reshape(B, S, H, Dh).transpose(0, 2, 1, 3)
    k = (x @ params.Wk.T + params.bk).reshape(B, S, H, Dh).transpose(0, 2, 1, 3)
    v = (x @ params.Wv.T + params.bv).reshape(B, S, H, Dh).transpose(0, 2, 1, 3)
    masks = params.head_masks(S)
    scores = jnp.einsum("bhqd,bhkd->bhqk", q, k) / math.sqrt(Dh)
    scores = scores + masks[None]
    attn = jax.nn.softmax(scores, axis=-1)
    out = jnp.einsum("bhqk,bhkd->bhqd", attn, v)
    out = out.transpose(0, 2, 1, 3).reshape(B, S, D)
    return out @ params.Wo.T + params.bo


# ----------------------------------- main ------------------------------------
if __name__ == "__main__":
    key = jax.random.PRNGKey(0)

    # --- small shapes consistent with the module (Dh=8 -> split-heads path) ---
    B, S, D, H = 2, 8, 32, 4
    x_key, p_key, key = jax.random.split(key, 3)
    x = jax.random.normal(x_key, (B, S, D), jnp.float32)
    params = DilatedAttentionParams(embedding_dim=D, num_heads=H,
                                    num_dilation_rates=4, key=p_key)
    out = jax.block_until_ready(dilated_attention_forward(params, x))
    ref = jax.block_until_ready(dilated_attention_reference(params, x))
    np.testing.assert_allclose(np.asarray(out), np.asarray(ref),
                               rtol=2e-2, atol=2e-3)

    # --- realistic shapes: exercises the fused lane-dense (B,S,H*Dh) path,
    #     (8,128) tiling and the multi-KV-block online-softmax path
    #     (S=256 -> 256-wide tiles, Dh=128 lane-dense, bf16 MXU feeds) ---
    B2, S2, D2, H2 = 2, 256, 512, 4
    x_key2, p_key2, key = jax.random.split(key, 3)
    x2 = jax.random.normal(x_key2, (B2, S2, D2), jnp.float32)
    params2 = DilatedAttentionParams(embedding_dim=D2, num_heads=H2,
                                     num_dilation_rates=4, key=p_key2)
    out2 = jax.block_until_ready(dilated_attention_forward(params2, x2))
    ref2 = jax.block_until_ready(dilated_attention_reference(params2, x2))
    np.testing.assert_allclose(np.asarray(out2), np.asarray(ref2),
                               rtol=2e-2, atol=1e-2)

    print("KERNEL_OK")
</pallas_src>

<mosaic_0001>
module attributes {stable_mosaic.version = 11 : i64} {
  func.func @dilated_flash_kernel(%arg0: i32, %arg1: i32, %arg2: i32, %arg3: i32, %arg4: memref<4xi32, #tpu.memory_space<smem>>, %arg5: memref<1x1x8x8xbf16, #tpu.memory_space<vmem>>, %arg6: memref<1x1x8x8xbf16, #tpu.memory_space<vmem>>, %arg7: memref<1x1x8x8xbf16, #tpu.memory_space<vmem>>, %arg8: memref<1x1x8x8xf32, #tpu.memory_space<vmem>>, %arg9: memref<8x8xbf16, #tpu.memory_space<vmem>>, %arg10: memref<8x1xf32, #tpu.memory_space<vmem>>, %arg11: memref<8x1xf32, #tpu.memory_space<vmem>>, %arg12: memref<8x8xf32, #tpu.memory_space<vmem>>) attributes {dimension_semantics = [#tpu.dimension_semantics<parallel>, #tpu.dimension_semantics<parallel>, #tpu.dimension_semantics<parallel>, #tpu.dimension_semantics<arbitrary>], iteration_bounds = array<i64: 2, 4, 1, 1>, scalar_prefetch = 1 : i64, scratch_operands = 4 : i64, tpu.core_type = #tpu.core_type<tc>, window_params = [{transform_indices = @transform_0, window_bounds = array<i64: 1, 1, 8, 8>}, {transform_indices = @transform_1, window_bounds = array<i64: 1, 1, 8, 8>}, {transform_indices = @transform_2, window_bounds = array<i64: 1, 1, 8, 8>}, {transform_indices = @transform_3, window_bounds = array<i64: 1, 1, 8, 8>}]} {
    %c0_i32 = arith.constant 0 : i32
    %0 = arith.cmpi eq, %arg3, %c0_i32 : i32
    %1 = arith.extui %0 : i1 to i32
    %c0_i32_0 = arith.constant 0 : i32
    %2 = arith.cmpi ne, %1, %c0_i32_0 : i32
    scf.if %2 {
      %c0_30 = arith.constant 0 : index
      %c0_31 = arith.constant 0 : index
      %c0_32 = arith.constant 0 : index
      %c0_33 = arith.constant 0 : index
      %53 = vector.load %arg5[%c0_30, %c0_31, %c0_32, %c0_33] : memref<1x1x8x8xbf16, #tpu.memory_space<vmem>>, vector<1x1x8x8xbf16>
      %54 = vector.shape_cast %53 : vector<1x1x8x8xbf16> to vector<8x8xbf16>
      %55 = arith.extf %54 : vector<8x8xbf16> to vector<8x8xf32>
      %cst_34 = arith.constant 0.353553385 : f32
      %56 = vector.broadcast %cst_34 : f32 to vector<8x8xf32>
      %57 = arith.mulf %55, %56 : vector<8x8xf32>
      %58 = arith.truncf %57 : vector<8x8xf32> to vector<8x8xbf16>
      %c0_35 = arith.constant 0 : index
      %c0_36 = arith.constant 0 : index
      %59 = vector.load %arg9[%c0_35, %c0_36] : memref<8x8xbf16, #tpu.memory_space<vmem>>, vector<8x8xbf16>
      tpu.vector_store %arg9[%c0_35, %c0_36], %58 {strides = array<i32>} : memref<8x8xbf16, #tpu.memory_space<vmem>>, vector<8x8xbf16>,
      %cst_37 = arith.constant -1.000000e+30 : f32
      %60 = vector.broadcast %cst_37 : f32 to vector<8x1xf32>
      %c0_38 = arith.constant 0 : index
      %c0_39 = arith.constant 0 : index
      %61 = vector.load %arg10[%c0_38, %c0_39] : memref<8x1xf32, #tpu.memory_space<vmem>>, vector<8x1xf32>
      tpu.vector_store %arg10[%c0_38, %c0_39], %60 {strides = array<i32>} : memref<8x1xf32, #tpu.memory_space<vmem>>, vector<8x1xf32>,
      %cst_40 = arith.constant 0.000000e+00 : f32
      %62 = vector.broadcast %cst_40 : f32 to vector<8x1xf32>
      %c0_41 = arith.constant 0 : index
      %c0_42 = arith.constant 0 : index
      %63 = vector.load %arg11[%c0_41, %c0_42] : memref<8x1xf32, #tpu.memory_space<vmem>>, vector<8x1xf32>
      tpu.vector_store %arg11[%c0_41, %c0_42], %62 {strides = array<i32>} : memref<8x1xf32, #tpu.memory_space<vmem>>, vector<8x1xf32>,
      %cst_43 = arith.constant 0.000000e+00 : f32
      %64 = vector.broadcast %cst_43 : f32 to vector<8x8xf32>
      %c0_44 = arith.constant 0 : index
      %c0_45 = arith.constant 0 : index
      %65 = vector.load %arg12[%c0_44, %c0_45] : memref<8x8xf32, #tpu.memory_space<vmem>>, vector<8x8xf32>
      tpu.vector_store %arg12[%c0_44, %c0_45], %64 {strides = array<i32>} : memref<8x8xf32, #tpu.memory_space<vmem>>, vector<8x8xf32>,
    } else {
    }
    %c0 = arith.constant 0 : index
    %c0_1 = arith.constant 0 : index
    %3 = vector.load %arg9[%c0, %c0_1] : memref<8x8xbf16, #tpu.memory_space<vmem>>, vector<8x8xbf16>
    %c0_2 = arith.constant 0 : index
    %c0_3 = arith.constant 0 : index
    %c0_4 = arith.constant 0 : index
    %c0_5 = arith.constant 0 : index
    %4 = vector.load %arg6[%c0_2, %c0_3, %c0_4, %c0_5] : memref<1x1x8x8xbf16, #tpu.memory_space<vmem>>, vector<1x1x8x8xbf16>
    %5 = vector.shape_cast %4 : vector<1x1x8x8xbf16> to vector<8x8xbf16>
    %cst = arith.constant dense<0.000000e+00> : vector<8x8xf32>
    %6 = tpu.matmul %3, %5, %cst {dimension_numbers = #tpu.dot_dimension_numbers<[1], [1], [0], [0], [0, 0, 1, 0], [], []>} : vector<8x8xbf16>, vector<8x8xbf16>, vector<8x8xf32> -> vector<8x8xf32>
    %7 = arith.index_cast %arg1 : i32 to index
    %8 = memref.load %arg4[%7] : memref<4xi32, #tpu.memory_space<smem>>
    %c8_i32 = arith.constant 8 : i32
    %9 = arith.muli %arg2, %c8_i32 : i32
    %10 = tpu.iota {dimensions = array<i32: 0>} : vector<8x8xi32>
    %11 = vector.broadcast %9 : i32 to vector<8x8xi32>
    %12 = arith.addi %11, %10 : vector<8x8xi32>
    %c8_i32_6 = arith.constant 8 : i32
    %13 = arith.muli %arg3, %c8_i32_6 : i32
    %14 = tpu.iota {dimensions = array<i32: 1>} : vector<8x8xi32>
    %15 = vector.broadcast %13 : i32 to vector<8x8xi32>
    %16 = arith.addi %15, %14 : vector<8x8xi32>
    %17 = arith.subi %12, %16 : vector<8x8xi32>
    %c1_i32 = arith.constant 1 : i32
    %18 = arith.subi %8, %c1_i32 : i32
    %19 = vector.broadcast %18 : i32 to vector<8x8xi32>
    %20 = arith.andi %17, %19 : vector<8x8xi32>
    %c0_i32_7 = arith.constant 0 : i32
    %21 = vector.broadcast %c0_i32_7 : i32 to vector<8x8xi32>
    %22 = arith.cmpi eq, %20, %21 : vector<8x8xi32>
    %cst_8 = arith.constant -1.000000e+30 : f32
    %23 = vector.broadcast %cst_8 : f32 to vector<8x8xf32>
    %24 = arith.select %22, %6, %23 : vector<8x8xi1>, vector<8x8xf32>
    %c0_9 = arith.constant 0 : index
    %c0_10 = arith.constant 0 : index
    %25 = vector.load %arg10[%c0_9, %c0_10] : memref<8x1xf32, #tpu.memory_space<vmem>>, vector<8x1xf32>
    %cst_11 = arith.constant dense<0xFF800000> : vector<8xf32>
    %26 = vector.multi_reduction <maximumf>, %24, %cst_11 [1] : vector<8x8xf32> to vector<8xf32>
    %27 = vector.shape_cast %26 : vector<8xf32> to vector<8x1xf32>
    %28 = arith.maximumf %25, %27 : vector<8x1xf32>
    %29 = arith.subf %25, %28 : vector<8x1xf32>
    %30 = math.exp %29 : vector<8x1xf32>
    %31 = vector.broadcast %28 : vector<8x1xf32> to vector<8x8xf32>
    %32 = arith.subf %24, %31 : vector<8x8xf32>
    %33 = math.exp %32 : vector<8x8xf32>
    %c0_12 = arith.constant 0 : index
    %c0_13 = arith.constant 0 : index
    %34 = vector.load %arg11[%c0_12, %c0_13] : memref<8x1xf32, #tpu.memory_space<vmem>>, vector<8x1xf32>
    %35 = arith.mulf %30, %34 : vector<8x1xf32>
    %cst_14 = arith.constant dense<0.000000e+00> : vector<8xf32>
    %36 = vector.multi_reduction <add>, %33, %cst_14 [1] : vector<8x8xf32> to vector<8xf32>
    %37 = vector.shape_cast %36 : vector<8xf32> to vector<8x1xf32>
    %38 = arith.addf %35, %37 : vector<8x1xf32>
    %c0_15 = arith.constant 0 : index
    %c0_16 = arith.constant 0 : index
    %39 = vector.load %arg11[%c0_15, %c0_16] : memref<8x1xf32, #tpu.memory_space<vmem>>, vector<8x1xf32>
    tpu.vector_store %arg11[%c0_15, %c0_16], %38 {strides = array<i32>} : memref<8x1xf32, #tpu.memory_space<vmem>>, vector<8x1xf32>,
    %c0_17 = arith.constant 0 : index
    %c0_18 = arith.constant 0 : index
    %40 = vector.load %arg12[%c0_17, %c0_18] : memref<8x8xf32, #tpu.memory_space<vmem>>, vector<8x8xf32>
    %41 = vector.broadcast %30 : vector<8x1xf32> to vector<8x8xf32>
    %42 = arith.mulf %41, %40 : vector<8x8xf32>
    %43 = arith.truncf %33 : vector<8x8xf32> to vector<8x8xbf16>
    %c0_19 = arith.constant 0 : index
    %c0_20 = arith.constant 0 : index
    %c0_21 = arith.constant 0 : index
    %c0_22 = arith.constant 0 : index
    %44 = vector.load %arg7[%c0_19, %c0_20, %c0_21, %c0_22] : memref<1x1x8x8xbf16, #tpu.memory_space<vmem>>, vector<1x1x8x8xbf16>
    %45 = vector.shape_cast %44 : vector<1x1x8x8xbf16> to vector<8x8xbf16>
    %cst_23 = arith.constant dense<0.000000e+00> : vector<8x8xf32>
    %46 = tpu.matmul %43, %45, %cst_23 {dimension_numbers = #tpu.dot_dimension_numbers<[1], [0], [0], [1], [0, 0, 1, 1], [], []>} : vector<8x8xbf16>, vector<8x8xbf16>, vector<8x8xf32> -> vector<8x8xf32>
    %47 = arith.addf %42, %46 : vector<8x8xf32>
    %c0_24 = arith.constant 0 : index
    %c0_25 = arith.constant 0 : index
    %48 = vector.load %arg12[%c0_24, %c0_25] : memref<8x8xf32, #tpu.memory_space<vmem>>, vector<8x8xf32>
    tpu.vector_store %arg12[%c0_24, %c0_25], %47 {strides = array<i32>} : memref<8x8xf32, #tpu.memory_space<vmem>>, vector<8x8xf32>,
    %c0_26 = arith.constant 0 : index
    %c0_27 = arith.constant 0 : index
    %49 = vector.load %arg10[%c0_26, %c0_27] : memref<8x1xf32, #tpu.memory_space<vmem>>, vector<8x1xf32>
    tpu.vector_store %arg10[%c0_26, %c0_27], %28 {strides = array<i32>} : memref<8x1xf32, #tpu.memory_space<vmem>>, vector<8x1xf32>,
    %c0_i32_28 = arith.constant 0 : i32
    %50 = arith.cmpi eq, %arg3, %c0_i32_28 : i32
    %51 = arith.extui %50 : i1 to i32
    %c0_i32_29 = arith.constant 0 : i32
    %52 = arith.cmpi ne, %51, %c0_i32_29 : i32
    scf.if %52 {
      %c0_30 = arith.constant 0 : index
      %c0_31 = arith.constant 0 : index
      %53 = vector.load %arg11[%c0_30, %c0_31] : memref<8x1xf32, #tpu.memory_space<vmem>>, vector<8x1xf32>
      %54 = tpu.reciprocal %53 {approx = true} : vector<8x1xf32> -> vector<8x1xf32>
      %55 = arith.mulf %53, %54 : vector<8x1xf32>
      %cst_32 = arith.constant 2.000000e+00 : f32
      %56 = vector.broadcast %cst_32 : f32 to vector<8x1xf32>
      %57 = arith.subf %56, %55 : vector<8x1xf32>
      %58 = arith.mulf %54, %57 : vector<8x1xf32>
      %c0_33 = arith.constant 0 : index
      %c0_34 = arith.constant 0 : index
      %59 = vector.load %arg12[%c0_33, %c0_34] : memref<8x8xf32, #tpu.memory_space<vmem>>, vector<8x8xf32>
      %60 = vector.broadcast %58 : vector<8x1xf32> to vector<8x8xf32>
      %61 = arith.mulf %59, %60 : vector<8x8xf32>
      %c0_35 = arith.constant 0 : index
      %c0_36 = arith.constant 0 : index
      %c0_37 = arith.constant 0 : index
      %c0_38 = arith.constant 0 : index
      %62 = vector.load %arg8[%c0_35, %c0_36, %c0_37, %c0_38] : memref<1x1x8x8xf32, #tpu.memory_space<vmem>>, vector<1x1x8x8xf32>
      %63 = vector.shape_cast %62 : vector<1x1x8x8xf32> to vector<8x8xf32>
      %64 = vector.shape_cast %61 : vector<8x8xf32> to vector<1x1x8x8xf32>
      tpu.vector_store %arg8[%c0_35, %c0_36, %c0_37, %c0_38], %64 {strides = array<i32>} : memref<1x1x8x8xf32, #tpu.memory_space<vmem>>, vector<1x1x8x8xf32>,
    } else {
    }
    return
  }
  func.func @transform_0(%arg0: i32, %arg1: i32, %arg2: i32, %arg3: i32, %arg4: memref<4xi32, #tpu.memory_space<smem>>) -> (i32, i32, i32, i32) {
    %c0_i32 = arith.constant 0 : i32
    %c0_i32_0 = arith.constant 0 : i32
    return %arg0, %arg1, %arg2, %c0_i32 : i32, i32, i32, i32
  }
  func.func @transform_1(%arg0: i32, %arg1: i32, %arg2: i32, %arg3: i32, %arg4: memref<4xi32, #tpu.memory_space<smem>>) -> (i32, i32, i32, i32) {
    %c0_i32 = arith.constant 0 : i32
    %c0_i32_0 = arith.constant 0 : i32
    return %arg0, %arg1, %arg3, %c0_i32 : i32, i32, i32, i32
  }
  func.func @transform_2(%arg0: i32, %arg1: i32, %arg2: i32, %arg3: i32, %arg4: memref<4xi32, #tpu.memory_space<smem>>) -> (i32, i32, i32, i32) {
    %c0_i32 = arith.constant 0 : i32
    %c0_i32_0 = arith.constant 0 : i32
    return %arg0, %arg1, %arg3, %c0_i32 : i32, i32, i32, i32
  }
  func.func @transform_3(%arg0: i32, %arg1: i32, %arg2: i32, %arg3: i32, %arg4: memref<4xi32, #tpu.memory_space<smem>>) -> (i32, i32, i32, i32) {
    %c0_i32 = arith.constant 0 : i32
    %c0_i32_0 = arith.constant 0 : i32
    return %arg0, %arg1, %arg2, %c0_i32 : i32, i32, i32, i32
  }
}

</mosaic_0001>

<bundles_post_ra>
// kernel: tpu_custom_call.1
= control target key start
LH: loop header
LB: loop body
LE: loop exit
PB: predicated region body
PF: predicated region fallthrough
CT: control target
= control target key end

     0   :  { %s992_s15 = smov [#allocation7]   ;;  %s1262_s0 = inlined_call_operand.hbm [shape: s32[4], index: 0, kind: input, shape index: {}]   ;;  %s1263_s1 = inlined_call_operand.hbm [shape: bf16[2,4,8,8], index: 1, kind: input, shape index: {}]   ;;  %s1264_s2 = inlined_call_operand.hbm [shape: bf16[2,4,8,8], index: 2, kind: input, shape index: {}]   ;;  %s1265_s3 = inlined_call_operand.hbm [shape: bf16[2,4,8,8], index: 3, kind: input, shape index: {}]   ;;  %s1266_s4 = inlined_call_operand.hbm [shape: f32[2,4,8,8], index: 4, kind: output, shape index: {}]  }
   0x1   :  { %1272 = sst [smem:[#allocation24_spill]] %s1264_s2 }
   0x2   :  { %10 = dma.hbm_to_smem %s1262_s0, 16, %s992_s15, [#allocation6] }
   0x3   :  { %946 = dma.done.wait [#allocation6], 16 }
   0x4   :  { %947 = vsyncadd [#allocation6], 4294967280 }
   0x5   :  { %12 = sfence }
   0x6   :  { %13 = vsyncpa [#allocation9], 0 }
   0x7   :  { %15 = vsyncpa [#allocation9 + $0x1], 0 }
   0x8   :  { %16 = vsyncpa [#allocation12], 0 }
   0x9   :  { %18 = vsyncpa [#allocation12 + $0x1], 0 }
   0xa   :  { %19 = vsyncpa [#allocation10], 0 }
   0xb   :  { %21 = vsyncpa [#allocation10 + $0x1], 0  ;;  %s1029_s18 = smov 0   ;;  %s1031_s19 = smov 0  }
   0xc   :  { %s1033_s20 = smov 0   ;;  %s1035_s21 = smov 0  }
   0xd   :  { %s1037_s22 = smov 0   ;;  %s1039_s0 = smov 0  }
   0xe   :  { %s1041_s23 = smov 0   ;;  %s1043_s24 = smov 0  }
   0xf LB: > { %1273 = sst [smem:[#allocation19_spill]] %s982_s0  ;;  %s1070_s25 = sadd.s32 4294967295, %s990_s24   ;;  %s990_s24 = sphi %s1043_s24, %s27_s24   ;;  %s986_s23 = sphi %s1041_s23, %s1290_s23   ;;  %s982_s0 = sphi %s1039_s0, %s1289_s0   ;;  %s978_s22 = sphi %s1037_s22, %s1288_s22   ;;  %s974_s21 = sphi %s1035_s21, %s1287_s21   ;;  %s970_s20 = sphi %s1033_s20, %s1293_s20   ;;  %s966_s19 = sphi %s1031_s19, %s1292_s19   ;;  %s962_s18 = sphi %s1029_s18, %s1291_s18  }
  0x10   : > { %1274 = sst [smem:[#allocation20_spill]] %s986_s23  ;;  %s654_s26 = sadd.s32 4294967294, %s990_s24  }
  0x11   : > { %s49_s27 = sadd.s32 1, %s982_s0  ;;  %s53_s28 = sadd.s32 1, %s986_s23 }
  0x12   : > { %p51_p0 = scmp.ge.s32.totalorder %s49_s27, 4  ;;  %s64_s29 = sadd.s32 1, %s970_s20 }
  0x13   : > { %p71_p1 = scmp.ne.s32.totalorder %s970_s20, %s966_s19  ;;  %p72_p2 = scmp.eq.s32.totalorder %s990_s24, 0 }
  0x14   : > { %s1295_s27 = smov (%p51_p0, %s49_s27), 0  ;;  %s1297_s28 = smov (!%p51_p0, %s53_s28), %s986_s23 }
  0x15   : > { %1275 = sst [smem:[#allocation21_spill]] %s1295_s27  ;;  %s58_s30 = ssub.s32 %s982_s0, %s1295_s27 }
  0x16   : > { %p1084_p3 = por %p72_p2, %p71_p1  ;;  %p55_p4 = scmp.ge.s32.totalorder %s1297_s28, 2 }
  0x17   : > { %p77_p5 = scmp.ne.s32.totalorder %s966_s19, %s962_s18  ;;  %p78_p6 = scmp.eq.s32.totalorder %s1070_s25, 0 }
  0x18   : > { %p165_p7 = scmp.eq.s32.totalorder %s1070_s25, 7  ;;  %s1299_s28 = smov (%p55_p4, %s1297_s28), 0 }
  0x19   : > { %1277 = sst [smem:[#allocation22_spill]] %s1299_s28  ;;  %p1094_p8 = por %p78_p6, %p77_p5 }
  0x1a   : > { %p1098_p9 = por %p165_p7, %p71_p1  ;;  %s57_s8 = ssub.s32 %s986_s23, %s1299_s28 }
  0x1b   : > { %p171_p10 = scmp.eq.s32.totalorder %s654_s26, 7  ;;  %s59_s9 = sor.u32 %s58_s30, %s57_s8 }
  0x1c   : > { %p62_p11 = scmp.eq.s32.totalorder %s59_s9, 0  ;;  %p717_p13 = scmp.lt.s32.totalorder %s990_s24, 8 }
  0x1d   : > { %p1104_p12 = por %p171_p10, %p77_p5  ;;  %s1267_s11 = sand.u32 1, %s970_s20  }
  0x1e   : > { %s1111_s12 = scalar_select %p62_p11, %s970_s20, %s64_s29  }
  0x1f   : > { %s1115_s13 = sshll.u32 %s1267_s11, 2  ;;  %s658_s14 = sshll.u32 %s986_s23, 2 }
  0x20   : > { %1281 = sst [smem:[#allocation23_spill]] %s1111_s12  ;;  %s201_s15 = sadd.s32 %s982_s0, %s658_s14 }
  0x21   : > { %p1121_p0 = pnand %p717_p13, %p1084_p3  ;;  %s1125_s17 = sshll.u32 %s201_s15, 6 }
  0x22   : > { %s212_s26 = sand.u32 1, %s990_s24   ;;  %s1283_s2 = sld [smem:[#allocation24_spill]] }
  0x23   : > { %s216_s9 = scalar_lea.vmem [#allocation11], %s1115_s13  ;;  %p666_p1 = scmp.ge.s32.totalorder %s990_s24, 1 }
  0x24   : > { %s226_s11 = sshll.u32 %s216_s9, 4  ;;  %p252_p2 = scmp.lt.s32.totalorder %s990_s24, 9  ;;  %s227_s11 = int_to_ptr.vmem [resolvable:$true] %s226_s11 }
  0x25   : > { %s1135_s5 = scalar_lea.sflag [#allocation12], %s212_s26  ;;  %p806_p3 = pneg %p1121_p0 }
  0x26   : > { %s817_s14 = scalar_lea.vmem %s227_s11, 64  ;;  %s993_s15 = smov [#allocation11]  }
  0x27   : > { %p818_p4 = scmp.ne.s32.totalorder %s227_s11, %s817_s14  ;;  %s822_s28 = sshll.u32 %s993_s15, 4  ;;  %s823_s28 = int_to_ptr.vmem [resolvable:$false] %s822_s28 }
  0x28   : > { %s224_s8 = scalar_lea.hbm %s1283_s2, %s1125_s17  ;;  %s824_s30 = scalar_lea.vmem %s823_s28, 128 }
  0x29   : > { %p820_p5 = pnand %p818_p4, %p806_p3  ;;  %p825_p7 = scmp.lt.s32.totalorder %s227_s11, %s823_s28 }
  0x2a   : > { %p826_p10 = scmp.lt.s32.totalorder %s824_s30, %s817_s14 }
  0x2b   : > { %p821_p6 = pneg %p820_p5 }
  0x2c   : > { %p827_p11 = por %p826_p10, %p825_p7 }
  0x2e   : > { %p828_p13 = pnand %p827_p11, %p821_p6 }
  0x30   : > { %831 = shalt.err (!%p828_p13)
}
  0x31   : > { %709 = dma.hbm_to_vmem [thread:$0]  (!%p1121_p0), %s224_s8, 64, %s227_s11, %s1135_s5  }
  0x32   : > { %p1149_p4 = pnand %p666_p1, %p252_p2  ;;  %s203_s9 = scalar_lea.hbm %s1263_s1, %s1125_s17 }
  0x33   : > { %s195_s14 = scalar_lea.vmem [#allocation8], %s1115_s13  ;;  %s245_s27 = scalar_lea.hbm %s1265_s3, %s1125_s17 }
  0x34   : > { %s205_s15 = sshll.u32 %s195_s14, 4  ;;  %s1285_s23 = sand.u32 1, %s970_s20   ;;  %s206_s15 = int_to_ptr.vmem [resolvable:$true] %s205_s15 }
  0x35   : > { %s192_s0 = scalar_lea.sflag [#allocation9], %s1285_s23  ;;  %s845_s11 = scalar_lea.vmem %s206_s15, 64 }
  0x36   : > { %p846_p5 = scmp.ne.s32.totalorder %s206_s15, %s845_s11  ;;  %s994_s8 = smov [#allocation8]  }
  0x37   : > { %s850_s12 = sshll.u32 %s994_s8, 4  ;;  %s851_s12 = int_to_ptr.vmem [resolvable:$false] %s850_s12 }
  0x38   : > { %p848_p1 = pnand %p846_p5, %p806_p3  ;;  %s852_s28 = scalar_lea.vmem %s851_s12, 128 }
  0x39   : > { %p853_p6 = scmp.lt.s32.totalorder %s206_s15, %s851_s12  ;;  %p854_p7 = scmp.lt.s32.totalorder %s852_s28, %s845_s11 }
  0x3a   : > { %p849_p2 = pneg %p848_p1 }
  0x3b   : > { %p855_p10 = por %p854_p7, %p853_p6 }
  0x3d   : > { %p856_p11 = pnand %p855_p10, %p849_p2 }
  0x3f   : > { %859 = shalt.err (!%p856_p11)
}
  0x40   : > { %706 = dma.hbm_to_vmem [thread:$0]  (!%p1121_p0), %s203_s9, 64, %s206_s15, %s192_s0  }
  0x41   : > { %s237_s2 = scalar_lea.vmem [#allocation13], %s1115_s13  ;;  %s995_s14 = smov [#allocation13]  }
  0x42   : > { %s247_s23 = sshll.u32 %s237_s2, 4  ;;  %s878_s12 = sshll.u32 %s995_s14, 4  ;;  %s248_s23 = int_to_ptr.vmem [resolvable:$true] %s247_s23  ;;  %s879_s12 = int_to_ptr.vmem [resolvable:$false] %s878_s12 }
  0x43   : > { %s873_s29 = scalar_lea.vmem %s248_s23, 64  ;;  %s880_s30 = scalar_lea.vmem %s879_s12, 128 }
  0x44   : > { %p874_p13 = scmp.ne.s32.totalorder %s248_s23, %s873_s29  ;;  %p881_p2 = scmp.lt.s32.totalorder %s248_s23, %s879_s12 }
  0x45   : > { %p882_p6 = scmp.lt.s32.totalorder %s880_s30, %s873_s29 }
  0x46   : > { %p876_p5 = pnand %p874_p13, %p806_p3 }
  0x47   : > { %p883_p7 = por %p882_p6, %p881_p2 }
  0x48   : > { %p877_p1 = pneg %p876_p5 }
  0x4a   : > { %p884_p10 = pnand %p883_p7, %p877_p1 }
  0x4c   : > { %887 = shalt.err (!%p884_p10)
}
  0x4d   : > { %712 = dma.hbm_to_vmem [thread:$0]  (!%p1121_p0), %s245_s27, 64, %s248_s23, %s1135_s5  }
  0x4e   : > { %256 = sbr.rel (%p1149_p4) target bundleno = 888 (0x378), region = 32  ;;  %s1184_s9 = sand.u32 (!%p1149_p4), 1, %s966_s19  }
  0x4f   : > { %s1187_s15 = sshll.u32 (!%p1149_p4), %s1184_s9, 2  ;;  %s259_s16 = scalar_lea.sflag (!%p1149_p4), [#allocation9], %s1184_s9 }
  0x50   : > { %s262_s11 = scalar_lea.vmem (!%p1149_p4), [#allocation8], %s1187_s15 }
  0x53   : > { %949 = dma.done.wait (%p1094_p8), %s259_s16, 64  }
  0x54   : > { %951 = vsyncadd (%p1094_p8), %s259_s16, 4294967232  ;;  %s267_s27 = sand.u32 1, %s1070_s25   ;;  %s271_s5 = scalar_lea.vmem [#allocation11], %s1187_s15 }
  0x55   : > { %s268_s17 = scalar_lea.sflag [#allocation12], %s267_s27 }
  0x56   : > { %953 = dma.done.wait (%p1094_p8), %s268_s17, 128  }
  0x57   : > { %955 = vsyncadd (%p1094_p8), %s268_s17, 4294967168  ;;  %vm327_vm0 = vcmask 64512   ;;  %v996_v0 = vmov 0.0   ;;  %vm997_vm1 = vmmov 0   ;;  %v330_v1 = vld [vmem:[%s271_s5] sm:$0xf]  ;;  %v380_v9 = vlaneseq }
  0x58   : > { %683 = vmatprep.subr.bf16.mxu0 %v996_v0  ;;  %328 = vst.msk [vmem:[#allocation5] sm:$0xff] %vm327_vm0, %v996_v0  ;;  %685 = vmatprep.mubr.msk.bf16.mxu0 %vm997_vm1, %v996_v0  ;;  %v318_v2 = vld [vmem:[%s262_s11] sm:$0xf]  ;;  %v336_v3 = vsel %vm327_vm0, %v330_v1, 0  ;;  %vm322_vm2 = vcmask 60416   ;;  %vm324_vm3 = vcmask 7168  }
  0x59   : > { %689 = vmatprep.subr.bf16.mxu1 %v996_v0  ;;  %691 = vmatprep.mubr.msk.bf16.mxu1 %vm997_vm1, %v996_v0  ;;  %v319_v4 = vunpack.c.l.bf16 %v318_v2  ;;  %v998_v8 = vmov -1e+30   ;;  %326 = vst.msk [vmem:[#allocation4] sm:$0xff] %vm324_vm3, %v996_v0  ;;  %s378_s25 = sld [smem:[#allocation7 + %s974_s21]]  ;;  %v381_v10 = vshrl.u32 %v380_v9, 7  ;;  %v386_v11 = vand.u32 127, %v380_v9 }
  0x5a   : > { %684 = vmatpush3.bf16.xpose.msra.mxu0 %v336_v3  ;;  %325 = vst.msk [vmem:[#allocation3] sm:$0xff] %vm324_vm3, %v998_v8  ;;  %v999_v21 = vmov 0   ;;  %vm431_vm5 = vcmask 1043456   ;;  %s280_s26 = scalar_lea.vmem [#allocation13], %s1187_s15  ;;  %s670_s8 = sshll.u32 %s1184_s9, 3 }
  0x5b   : > { %v320_v5 = vmul.f32 0.35355338, %v319_v4  ;;  %v389_v12 = vsub.s32 %v381_v10, %v386_v11  ;;  %788 = vset.pattern.permute.xlu0 %v999_v21  ;;  %789 = vset.pattern.permute.xlu1 %v999_v21  ;;  %v427_v26 = vld [vmem:[%s280_s26] sm:$0xf]  ;;  %s675_s28 = sshll.u32 %s978_s22, 2  ;;  %s312_s29 = scalar_lea.vmem [#allocation14], %s670_s8 }
  0x5c   : > { %v433_v27 = vsel %vm431_vm5, %v427_v26, 0  ;;  %s507_s2 = sadd.s32 %s974_s21, %s675_s28  ;;  %s511_s14 = sshll.u32 %s312_s29, 4  ;;  %s512_s14 = int_to_ptr.vmem [resolvable:$true] %s511_s14 }
  0x5d   : > { %v321_v6 = vpack.c.bf16 %v320_v5, %v320_v5  ;;  %690 = vmatpush3.bf16.msra.mxu1 %v433_v27  ;;  %s676_s23 = sshll.u32 %s507_s2, 7  ;;  %s495_s13 = scalar_lea.sflag [#allocation10], %s1184_s9 }
  0x5e   : > { %s509_s0 = scalar_lea.hbm %s1266_s4, %s676_s23  ;;  %s888_s15 = scalar_lea.vmem %s512_s14, 128 }
  0x5f   : > { %323 = vst.msk [vmem:[#allocation2] sm:$0xf] %vm322_vm2, %v321_v6  ;;  %s672_s6 = sadd.s32 4294967295, %s378_s25  ;;  %v419_v45 = vld [vmem:[#allocation5] sm:$0xff]  ;;  %p889_p8 = scmp.ne.s32.totalorder %s512_s14, %s888_s15 }
  0x60   : > { %v391_v13 = vstv %s672_s6  ;;  %v411_v36 = vld [vmem:[#allocation4] sm:$0xff]  ;;  %s1000_s21 = smov [#allocation14]  }
  0x61   : > { %v392_v14 = vand.u32 %v391_v13, %v389_v12  ;;  %v395_v22 = vld [vmem:[#allocation3] sm:$0xff]  ;;  %p890_p0 = pnand %p889_p8, %p1098_p9  ;;  %s892_s22 = sshll.u32 %s1000_s21, 4  ;;  %s893_s22 = int_to_ptr.vmem [resolvable:$false] %s892_s22 }
  0x62   : > { %s894_s16 = scalar_lea.vmem %s893_s22, 256  ;;  %p895_p4 = scmp.lt.s32.totalorder %s512_s14, %s893_s22 }
  0x63   : > { %vm393_vm4 = vcmp.eq.s32.totalorder %v392_v14, 0  ;;  %p891_p3 = pneg %p890_p0  ;;  %p896_p11 = scmp.lt.s32.totalorder %s894_s16, %s888_s15 }
  0x65   : > { %p897_p13 = por %p896_p11, %p895_p4 }
  0x66   : > { %v329_v7 = vld [vmem:[#allocation2] sm:$0xf] }
  0x67   : > { %686 = vmatmul.mubr.msk.bf16.vlgmr.msra.gmra.mxu0 %vm327_vm0, %v329_v7  ;;  %p898_p5 = pnand %p897_p13, %p891_p3 }
 0x127   : > { %v372_v15 = vpop.f32.mrf.mxu0 }
 0x128   : > { %v394_v16 = vsel %vm393_vm4, %v372_v15, -1e+30 }
 0x129   : > { %v687_v17 = vpop.f32.mrf.mxu0  ;;  %v396_v18 = vsel %vm327_vm0, %v394_v16, -inf }
 0x12a   : > { %397 = vmax.xlane.f32.xlu0 %v396_v18 }
 0x12b   : > { %v375_v19 = vpop.f32.mrf.mxu0 }
 0x12d   : > { %v688_v20 = vpop.f32.mrf.mxu0 }
 0x1b3   : > { %v398_v23 = vpop.xlane.xlu0 %397 }
 0x1b4   : > { %v399_v24 = vmax.f32 %v395_v22, %v398_v23 }
 0x1b6   : > { %v400_v25 = vsub.f32 %v395_v22, %v399_v24  ;;  %477 = vst.msk [vmem:[#allocation3] sm:$0xff] %vm324_vm3, %v399_v24  ;;  %405 = vperm.xlu0 %788, %v399_v24  }
 0x1b8   : > { %v401_v32 = vmul.f32 1.442695, %v400_v25 }
 0x231   : > { %v406_v28 = vpop.permute.xlu0 %405 }
 0x232   : > { %v408_v29 = vsub.f32 %v394_v16, %v406_v28 }
 0x234   : > { %v409_v30 = vmul.f32 1.442695, %v408_v29 }
 0x236   : > { %790 = vpow2.f32 %v409_v30 }
 0x237   : > { %792 = vpow2.f32 %v401_v32 }
 0x243   : > { %v791_v31 = vpop.eup %790 }
 0x244   : > { %v413_v33 = vsel %vm327_vm0, %v791_v31, 0.0  ;;  %v426_v34 = vpack.c.bf16 %v791_v31, %v791_v31  ;;  %v793_v35 = vpop.eup %792 }
 0x245   : > { %414 = vadd.xlane.f32.xlu1 %v413_v33  ;;  %v412_v37 = vmul.f32 %v793_v35, %v411_v36 }
 0x246   : > { %692 = vmatmul.mubr.msk.bf16.vlgmr.msra.gmra.mxu1 %vm327_vm0, %v426_v34 }
 0x256   : > { %422 = vperm.xlu1 %789, %v793_v35  }
 0x2ce   : > { %v415_v38 = vpop.xlane.xlu1 %414 }
 0x2cf   : > { %v416_v39 = vadd.f32 %v415_v38, %v412_v37 }
 0x2d1   : > { %418 = vst.msk [vmem:[#allocation4] sm:$0xff] %vm324_vm3, %v416_v39 }
 0x2d2   : > { %v423_v46 = vpop.permute.xlu1 %422 }
 0x2d3   : > { %v425_v47 = vmul.f32 %v423_v46, %v419_v45 }
 0x2d8   : > { %v481_v40 = vld [vmem:[#allocation4] sm:$0xff] }
 0x2d9   : > { %794 = vrcp.f32 %v481_v40 }
 0x2e6   : > { %v795_v41 = vpop.eup %794 }
 0x2e7   : > { %v483_v42 = vmul.f32 %v795_v41, %v481_v40 }
 0x2e9   : > { %v484_v43 = vsub.f32 2.0, %v483_v42 }
 0x2eb   : > { %v485_v44 = vmul.f32 %v795_v41, %v484_v43 }
 0x2ed   : > { %489 = vperm.xlu1 %789, %v485_v44  }
 0x306   : > { %v469_v48 = vpop.f32.mrf.mxu1 }
 0x307   : > { %v475_v49 = vadd.f32 %v469_v48, %v425_v47 }
 0x308   : > { %v693_v50 = vpop.f32.mrf.mxu1 }
 0x309   : > { %476 = vst.msk [vmem:[#allocation5] sm:$0xff] %vm327_vm0, %v475_v49 }
 0x30a   : > { %v472_v51 = vpop.f32.mrf.mxu1 }
 0x30c   : > { %v694_v52 = vpop.f32.mrf.mxu1 }
 0x310   : > { %v486_v53 = vld [vmem:[#allocation5] sm:$0xff] }
 0x368   : > { %v490_v54 = vpop.permute.xlu1 %489 }
 0x369   : > { %v492_v55 = vmul.f32 %v490_v54, %v486_v53 }
 0x36b   : > { %493 = vst.msk [vmem:[%s312_s29] sm:$0xff] %vm327_vm0, %v492_v55 }
 0x36c   : > { %901 = shalt.err (!%p898_p5)
}
 0x36d   : > { %s902_s11 = scalar_lea.hbm %s509_s0, 128  ;;  %s906_s17 = scalar_lea.hbm %s1266_s4, 1024 }
 0x36e   : > { %p903_p1 = scmp.ne.s32.totalorder %s509_s0, %s902_s11  ;;  %p907_p7 = scmp.lt.s32.totalorder %s509_s0, %s1266_s4 }
 0x36f   : > { %p908_p10 = scmp.lt.s32.totalorder %s906_s17, %s902_s11 }
 0x370   : > { %p904_p2 = pnand %p903_p1, %p1098_p9 }
 0x371   : > { %p909_p8 = por %p908_p10, %p907_p7 }
 0x372   : > { %p905_p6 = pneg %p904_p2 }
 0x374   : > { %p910_p0 = pnand %p909_p8, %p905_p6 }
 0x376   : > { %913 = shalt.err (!%p910_p0)
}
 0x377   : > { %701 = dma.vmem_to_hbm [thread:$0]  (%p1098_p9), %s512_s14, 128, %s509_s0, %s495_s13  }
 0x378 PF: > { %p718_p3 = scmp.ge.s32.totalorder %s990_s24, 2  ;;  %s523_s6 = sand.u32 1, %s962_s18  }
 0x379   : > { %s524_s26 = scalar_lea.sflag [#allocation10], %s523_s6 }
 0x37a   : > { %p714_p4 = pnand %p718_p3, %p1104_p12 }
 0x37c   : > { %p715_p11 = pneg %p714_p4 }
 0x37e   : > { %957 = dma.done.wait (%p715_p11), %s524_s26, 128  }
 0x37f   : > { %959 = vsyncadd (%p715_p11), %s524_s26, 4294967168  ;;  %s27_s24 = sadd.s32 1, %s990_s24   ;;  %s1286_s8 = sld [smem:[#allocation23_spill]] }
 0x380   : > { %p24_p13 = scmp.ge.s32.totalorder %s27_s24, 10   ;;  %s1287_s21 = sld [smem:[#allocation19_spill]] }
 0x381   : > { %s1288_s22 = sld [smem:[#allocation20_spill]]  ;;  %s1291_s18 = smov %s966_s19 }
 0x382   : > { %s1289_s0 = sld [smem:[#allocation21_spill]]  ;;  %s1292_s19 = smov %s970_s20 }
 0x383   : > { %s1290_s23 = sld [smem:[#allocation22_spill]]  ;;  %26 = sbr.rel (!%p24_p13) target bundleno = 15 (0xf), region = 109 }
 0x385   : > { %s1293_s20 = smov %s1286_s8 }
 0x388   :  { %529 = vsyncpa [#allocation9], 1 }
 0x389   :  { %531 = vsyncpa [#allocation9 + $0x1], 1 }
 0x38a   :  { %532 = vsyncpa [#allocation12], 1 }
 0x38b   :  { %534 = vsyncpa [#allocation12 + $0x1], 1 }
 0x38c   :  { %535 = vsyncpa [#allocation10], 1 }
 0x38d   :  { %537 = vsyncpa [#allocation10 + $0x1], 1 }

</bundles_post_ra>
